<compile_context>
chip_gen: v7x
topology: tpu7x:2x2x1
jax: 0.10.0
libtpu: 0.0.40
codegen_flags: <defaults>
</compile_context>

<pallas_src>
import functools

import jax
import jax.numpy as jnp
from jax import lax
from jax.experimental import pallas as pl
from jax.experimental.pallas import tpu as pltpu

EPS = 1e-5
LANE = 128     # vreg lane width
SUBLANE = 8    # vreg sublane count (f32)


def _round_up(n, m):
    return (n + m - 1) // m * m


def _cdiv(a, b):
    return -(-a // b)


def _ln_hidden(h, gamma, beta, n_true):
    """One-pass LayerNorm over the last axis of `h`.

    Valid only because padded lanes of `h` are exactly 0 (padded weight
    columns / biases are zero-padded, ReLU keeps zeros), so sum(h) and
    sum(h*h) over the padded width equal the true-width sums.  gamma/beta are
    zero-padded, so padded output lanes stay exactly zero.
    """
    inv_n = jnp.float32(1.0 / n_true)
    mean = jnp.sum(h, axis=-1, keepdims=True) * inv_n
    var = jnp.sum(h * h, axis=-1, keepdims=True) * inv_n - mean * mean
    inv = lax.rsqrt(var + EPS)          # EUP slot (free vs VALU)
    return (h - mean) * inv * gamma + beta


def _ln_input(h, gamma, beta, n_true, n_pad):
    """Two-pass LayerNorm for the raw-observation feature_norm.

    Raw observations can have |mean| >> std, where the one-pass E[x^2]-mean^2
    form cancels catastrophically.  Padded lanes of `h` are exactly 0, so each
    contributes mean^2 to sum((h-mean)^2); subtracting (n_pad-n_true)*mean^2
    recovers the exact true-width sum of squared deviations.
    """
    inv_n = jnp.float32(1.0 / n_true)
    mean = jnp.sum(h, axis=-1, keepdims=True) * inv_n
    d = h - mean
    ss = (jnp.sum(d * d, axis=-1, keepdims=True)
          - jnp.float32(n_pad - n_true) * mean * mean)
    inv = lax.rsqrt(ss * inv_n + EPS)   # EUP slot
    return d * inv * gamma + beta       # padded lanes -> 0 (gamma/beta padded 0)


def mlp_base_kernel(layer_n, d_true, d_pad, h_true,
                    x_ref,
                    fn_g_ref, fn_b_ref,
                    w1_ref, b1_ref, g1_ref, be1_ref,
                    wh_ref, bh_ref, gh_ref, beh_ref,
                    out_ref):
    x = x_ref[...].astype(jnp.float32)

    # feature_norm: LayerNorm over obs_dim (true width d_true), two-pass var.
    x = _ln_input(x, fn_g_ref[...], fn_b_ref[...], d_true, d_pad)

    def fused_layer(h, w_bf16, b, g, be):
        # Linear (bf16 x bf16 MXU matmul, f32 accumulate) -> ReLU -> LayerNorm.
        y = jnp.dot(h.astype(jnp.bfloat16), w_bf16,
                    preferred_element_type=jnp.float32) + b
        y = jnp.maximum(y, 0.0)
        return _ln_hidden(y, g, be, h_true)

    # fc1
    h = fused_layer(x, w1_ref[...], b1_ref[...], g1_ref[...], be1_ref[...])

    # fc2[i], layer_N times.
    if layer_n <= 4:
        # Shallow (typical MAPPO: 1-2 layers): static unroll.
        for i in range(layer_n):
            h = fused_layer(h, wh_ref[i], bh_ref[i], gh_ref[i], beh_ref[i])
    else:
        # Deep stacks: real loop + dynamic leading-axis index bounds vreg
        # live ranges and avoids spills.
        def body(i, carry):
            return fused_layer(carry, wh_ref[i], bh_ref[i], gh_ref[i],
                               beh_ref[i])
        h = lax.fori_loop(0, layer_n, body, h)

    out_ref[...] = h.astype(out_ref.dtype)


def prepare_params(params):
    """One-time parameter preparation: zero-pad feature dims to the 128-lane
    width and cast Linear weights to bf16 (native MXU dtype).

    Call ONCE (e.g. at model build / weight-update time) and reuse the result
    for every forward; doing this per call wastes a full HBM pass over the
    weights.  Returns (prepared_arrays, meta) where meta holds static Python
    ints so the forward wrapper stays jit-friendly.
    """
    D = params["fn_g"].shape[1]
    H = params["w1"].shape[1]
    L = int(params["wh"].shape[0])
    D_pad = _round_up(D, LANE)
    H_pad = _round_up(H, LANE)

    def pad2(a, r, c):
        return jnp.pad(a, ((0, r - a.shape[0]), (0, c - a.shape[1])))

    def pad3(a, r, c):
        return jnp.pad(a, ((0, 0), (0, r - a.shape[1]), (0, c - a.shape[2])))

    if L > 0:
        wh = pad3(params["wh"], H_pad, H_pad).astype(jnp.bfloat16)
        bh = pad3(params["bh"], 1, H_pad)
        gh = pad3(params["gh"], 1, H_pad)
        beh = pad3(params["beh"], 1, H_pad)
    else:
        # Keep block shapes non-empty; never read when layer_n == 0.
        wh = jnp.zeros((1, H_pad, H_pad), jnp.bfloat16)
        bh = jnp.zeros((1, 1, H_pad), jnp.float32)
        gh = jnp.zeros((1, 1, H_pad), jnp.float32)
        beh = jnp.zeros((1, 1, H_pad), jnp.float32)

    prep = dict(
        fn_g=pad2(params["fn_g"], 1, D_pad),
        fn_b=pad2(params["fn_b"], 1, D_pad),
        w1=pad2(params["w1"], D_pad, H_pad).astype(jnp.bfloat16),
        b1=pad2(params["b1"], 1, H_pad),
        g1=pad2(params["g1"], 1, H_pad),
        be1=pad2(params["be1"], 1, H_pad),
        wh=wh, bh=bh, gh=gh, beh=beh,
    )
    meta = dict(D=D, H=H, L=L, D_pad=D_pad, H_pad=H_pad)
    return prep, meta


def mlp_base_forward(x, prep, meta, *, block_rows=512, min_grid_steps=2,
                     vmem_limit_bytes=48 * 1024 * 1024):
    """x: (B, obs_dim) float. prep/meta from prepare_params().
    Returns (B, hidden_size) float32.

    block_rows: target rows per batch tile. 512-1024 is best on v5e/v6e
    (raise vmem_limit_bytes towards ~100 MiB for very large tiles); 256-512 on
    v7x (64 MiB VMEM, and min_grid_steps=2 keeps both TensorCores busy).
    """
    B, D_in = x.shape
    D, H, L = meta["D"], meta["H"], meta["L"]
    D_pad, H_pad = meta["D_pad"], meta["H_pad"]
    assert D_in == D
    Ls = prep["wh"].shape[0]

    # --- batch tiling policy ---
    # Target ~block_rows rows per tile, but:
    #   * split into >= min_grid_steps tiles so the "parallel" grid axis can
    #     shard across v7x's two TensorCores (harmless on v5e/v6e), and
    #   * size the tile as ceil(B / n_tiles) rounded to the sublane so batch
    #     padding waste is < 8 rows per tile instead of up to a full tile.
    n_tiles = max(_cdiv(B, block_rows), 1)
    if B > SUBLANE:
        n_tiles = max(n_tiles, min_grid_steps)
    tile_b = _round_up(_cdiv(B, n_tiles), SUBLANE)
    grid_b = _cdiv(B, tile_b)
    B_pad = grid_b * tile_b

    xp = jnp.pad(x, ((0, B_pad - B), (0, D_pad - D)))

    def rows(i):          # batch-tiled operands
        return (i, 0)

    def whole2(i):        # grid-invariant 2-D params
        return (0, 0)

    def whole3(i):        # grid-invariant stacked 3-D params
        return (0, 0, 0)

    # Grid-invariant parameters: single-buffered (constant index_map =>
    # double-buffering buys no overlap, only doubles VMEM footprint).
    single = pl.Buffered(1)

    def p2(cols):
        return pl.BlockSpec((1, cols), whole2, pipeline_mode=single)

    def p3(rows_):
        return pl.BlockSpec((Ls, rows_, H_pad), whole3, pipeline_mode=single)

    # TODO(synk): for very wide/deep stacks where the resident weight block
    # (Ls*H_pad^2*2 B + D_pad*H_pad*2 B) exceeds ~40 MiB (v7x's 64 MiB VMEM),
    # switch `wh` to memory_space=pl.ANY and manually double-buffer one
    # layer's weights at a time with pltpu.make_async_copy, overlapping layer
    # i+1's weight DMA with layer i's matmul.

    kernel = functools.partial(mlp_base_kernel, L, D, D_pad, H)

    # Advisory cost estimate so XLA can schedule/overlap neighbours.
    flops = 2 * B_pad * H_pad * (D_pad + L * H_pad)
    param_bytes = sum(int(prep[k].size) * prep[k].dtype.itemsize
                      for k in ("fn_g", "fn_b", "w1", "b1", "g1", "be1",
                                "wh", "bh", "gh", "beh"))
    bytes_accessed = (int(xp.size) * xp.dtype.itemsize
                      + B_pad * H_pad * 4 + param_bytes)
    cost = pl.CostEstimate(flops=int(flops),
                           transcendentals=int(B_pad * (2 + L)),
                           bytes_accessed=int(bytes_accessed))

    out = pl.pallas_call(
        kernel,
        out_shape=jax.ShapeDtypeStruct((B_pad, H_pad), jnp.float32),
        grid_spec=pltpu.PrefetchScalarGridSpec(
            num_scalar_prefetch=0,
            grid=(grid_b,),
            in_specs=[
                pl.BlockSpec((tile_b, D_pad), rows),       # x (streamed)
                p2(D_pad),                                 # feature_norm gamma
                p2(D_pad),                                 # feature_norm beta
                pl.BlockSpec((D_pad, H_pad), whole2,
                             pipeline_mode=single),        # fc1 W (bf16)
                p2(H_pad),                                 # fc1 b
                p2(H_pad),                                 # fc1 LN gamma
                p2(H_pad),                                 # fc1 LN beta
                p3(H_pad),                                 # fc2 W stack (bf16)
                p3(1),                                     # fc2 b
                p3(1),                                     # fc2 LN gamma
                p3(1),                                     # fc2 LN beta
            ],
            out_specs=pl.BlockSpec((tile_b, H_pad), rows),
        ),
        compiler_params=pltpu.CompilerParams(
            dimension_semantics=("parallel",),
            vmem_limit_bytes=vmem_limit_bytes,
        ),
        cost_estimate=cost,
    )(xp, prep["fn_g"], prep["fn_b"],
      prep["w1"], prep["b1"], prep["g1"], prep["be1"],
      prep["wh"], prep["bh"], prep["gh"], prep["beh"])

    # Strip batch / feature padding.
    return out[:B, :H]


def init_params(key, obs_dim, hidden_size, layer_n):
    """Orthogonal init with relu gain (sqrt(2)), zero biases,
    LayerNorm gamma=1 / beta=0 — mirrors the module's init."""
    gain = jnp.sqrt(2.0)  # nn.init.calculate_gain('relu')
    orth = jax.nn.initializers.orthogonal()
    k1, *kh = jax.random.split(key, 1 + max(layer_n, 1))
    w1 = gain * orth(k1, (obs_dim, hidden_size), jnp.float32)
    if layer_n > 0:
        wh = jnp.stack([gain * orth(k, (hidden_size, hidden_size), jnp.float32)
                        for k in kh[:layer_n]])
    else:
        wh = jnp.zeros((0, hidden_size, hidden_size), jnp.float32)
    return dict(
        fn_g=jnp.ones((1, obs_dim), jnp.float32),
        fn_b=jnp.zeros((1, obs_dim), jnp.float32),
        w1=w1,
        b1=jnp.zeros((1, hidden_size), jnp.float32),
        g1=jnp.ones((1, hidden_size), jnp.float32),
        be1=jnp.zeros((1, hidden_size), jnp.float32),
        wh=wh,
        bh=jnp.zeros((layer_n, 1, hidden_size), jnp.float32),
        gh=jnp.ones((layer_n, 1, hidden_size), jnp.float32),
        beh=jnp.zeros((layer_n, 1, hidden_size), jnp.float32),
    )


def reference_forward(x, params, *, bf16_matmul=False):
    """Pure-JAX reference. bf16_matmul=True mimics the kernel's MXU casting."""
    def ln(h, g, b):
        m = jnp.mean(h, -1, keepdims=True)
        v = jnp.mean((h - m) ** 2, -1, keepdims=True)
        return (h - m) / jnp.sqrt(v + EPS) * g + b

    def dot(a, w):
        if bf16_matmul:
            a = a.astype(jnp.bfloat16)
            w = w.astype(jnp.bfloat16)
        return jnp.dot(a, w, preferred_element_type=jnp.float32)

    h = ln(x.astype(jnp.float32), params["fn_g"], params["fn_b"])
    h = ln(jnp.maximum(dot(h, params["w1"]) + params["b1"], 0.0),
           params["g1"], params["be1"])
    for i in range(params["wh"].shape[0]):
        h = ln(jnp.maximum(dot(h, params["wh"][i]) + params["bh"][i], 0.0),
               params["gh"][i], params["beh"][i])
    return h


if __name__ == "__main__":
    # Small, deliberately unaligned shapes: exercises the row-padding path
    # (12 -> 16 rows), the lane-padding path (20 -> 128, 48 -> 128) and a
    # multi-step "parallel" grid (2 tiles of 8 rows, min_grid_steps policy).
    batch, obs_dim, hidden_size, layer_n = 12, 20, 48, 2

    key = jax.random.PRNGKey(0)
    kx, kp = jax.random.split(key)
    x = jax.random.normal(kx, (batch, obs_dim), jnp.float32)
    params = init_params(kp, obs_dim, hidden_size, layer_n)

    # One-time parameter preparation (pad + bf16 cast) — hoisted out of the
    # per-call forward; reuse `prep` / `meta` across steps.
    prep, meta = prepare_params(params)

    out = mlp_base_forward(x, prep, meta, block_rows=8)
    out = jax.block_until_ready(out)

    assert out.shape == (batch, hidden_size)
    assert not bool(jnp.any(jnp.isnan(out)))

    # Tight check vs a reference that applies the same bf16 weight/activation
    # cast used on the MXU.
    ref_bf16 = reference_forward(x, params, bf16_matmul=True)
    assert jnp.allclose(out, ref_bf16, atol=5e-3, rtol=5e-3), \
        "mismatch vs bf16-matched reference"

    # Loose check vs the exact-f32 PyTorch-semantics reference (bf16 matmuls
    # introduce ~0.4% relative error per layer).
    ref_f32 = reference_forward(x, params, bf16_matmul=False)
    assert jnp.allclose(out, ref_f32, atol=5e-2, rtol=5e-2), \
        "mismatch vs f32 reference"

    print("KERNEL_OK")
</pallas_src>

<mosaic_0001>
module attributes {stable_mosaic.version = 11 : i64} {
  func.func @mlp_base_kernel(%arg0: i32, %arg1: memref<8x128xf32, #tpu.memory_space<vmem>>, %arg2: memref<1x128xf32, #tpu.memory_space<vmem>>, %arg3: memref<1x128xf32, #tpu.memory_space<vmem>>, %arg4: memref<128x128xbf16, #tpu.memory_space<vmem>>, %arg5: memref<1x128xf32, #tpu.memory_space<vmem>>, %arg6: memref<1x128xf32, #tpu.memory_space<vmem>>, %arg7: memref<1x128xf32, #tpu.memory_space<vmem>>, %arg8: memref<2x128x128xbf16, #tpu.memory_space<vmem>>, %arg9: memref<2x1x128xf32, #tpu.memory_space<vmem>>, %arg10: memref<2x1x128xf32, #tpu.memory_space<vmem>>, %arg11: memref<2x1x128xf32, #tpu.memory_space<vmem>>, %arg12: memref<8x128xf32, #tpu.memory_space<vmem>>) attributes {dimension_semantics = [#tpu.dimension_semantics<parallel>], iteration_bounds = array<i64: 2>, scalar_prefetch = 0 : i64, scratch_operands = 0 : i64, tpu.core_type = #tpu.core_type<tc>, window_params = [{transform_indices = @transform_0, window_bounds = array<i64: 8, 128>}, {pipeline_mode = #tpu.pipeline_mode<synchronous>, transform_indices = @transform_1, window_bounds = array<i64: 1, 128>}, {pipeline_mode = #tpu.pipeline_mode<synchronous>, transform_indices = @transform_2, window_bounds = array<i64: 1, 128>}, {pipeline_mode = #tpu.pipeline_mode<synchronous>, transform_indices = @transform_3, window_bounds = array<i64: 128, 128>}, {pipeline_mode = #tpu.pipeline_mode<synchronous>, transform_indices = @transform_4, window_bounds = array<i64: 1, 128>}, {pipeline_mode = #tpu.pipeline_mode<synchronous>, transform_indices = @transform_5, window_bounds = array<i64: 1, 128>}, {pipeline_mode = #tpu.pipeline_mode<synchronous>, transform_indices = @transform_6, window_bounds = array<i64: 1, 128>}, {pipeline_mode = #tpu.pipeline_mode<synchronous>, transform_indices = @transform_7, window_bounds = array<i64: 2, 128, 128>}, {pipeline_mode = #tpu.pipeline_mode<synchronous>, transform_indices = @transform_8, window_bounds = array<i64: 2, 1, 128>}, {pipeline_mode = #tpu.pipeline_mode<synchronous>, transform_indices = @transform_9, window_bounds = array<i64: 2, 1, 128>}, {pipeline_mode = #tpu.pipeline_mode<synchronous>, transform_indices = @transform_10, window_bounds = array<i64: 2, 1, 128>}, {transform_indices = @transform_11, window_bounds = array<i64: 8, 128>}]} {
    %c0 = arith.constant 0 : index
    %c0_0 = arith.constant 0 : index
    %0 = vector.load %arg1[%c0, %c0_0] : memref<8x128xf32, #tpu.memory_space<vmem>>, vector<8x128xf32>
    %c0_1 = arith.constant 0 : index
    %c0_2 = arith.constant 0 : index
    %1 = vector.load %arg2[%c0_1, %c0_2] : memref<1x128xf32, #tpu.memory_space<vmem>>, vector<1x128xf32>
    %c0_3 = arith.constant 0 : index
    %c0_4 = arith.constant 0 : index
    %2 = vector.load %arg3[%c0_3, %c0_4] : memref<1x128xf32, #tpu.memory_space<vmem>>, vector<1x128xf32>
    %cst = arith.constant dense<0.000000e+00> : vector<8xf32>
    %3 = vector.multi_reduction <add>, %0, %cst [1] : vector<8x128xf32> to vector<8xf32>
    %4 = vector.shape_cast %3 : vector<8xf32> to vector<8x1xf32>
    %cst_5 = arith.constant 5.000000e-02 : f32
    %5 = vector.broadcast %cst_5 : f32 to vector<8x1xf32>
    %6 = arith.mulf %4, %5 : vector<8x1xf32>
    %7 = vector.broadcast %6 : vector<8x1xf32> to vector<8x128xf32>
    %8 = arith.subf %0, %7 : vector<8x128xf32>
    %9 = arith.mulf %8, %8 : vector<8x128xf32>
    %cst_6 = arith.constant dense<0.000000e+00> : vector<8xf32>
    %10 = vector.multi_reduction <add>, %9, %cst_6 [1] : vector<8x128xf32> to vector<8xf32>
    %11 = vector.shape_cast %10 : vector<8xf32> to vector<8x1xf32>
    %cst_7 = arith.constant 1.080000e+02 : f32
    %12 = vector.broadcast %cst_7 : f32 to vector<8x1xf32>
    %13 = arith.mulf %12, %6 : vector<8x1xf32>
    %14 = arith.mulf %13, %6 : vector<8x1xf32>
    %15 = arith.subf %11, %14 : vector<8x1xf32>
    %cst_8 = arith.constant 5.000000e-02 : f32
    %16 = vector.broadcast %cst_8 : f32 to vector<8x1xf32>
    %17 = arith.mulf %15, %16 : vector<8x1xf32>
    %cst_9 = arith.constant 9.99999974E-6 : f32
    %18 = vector.broadcast %cst_9 : f32 to vector<8x1xf32>
    %19 = arith.addf %17, %18 : vector<8x1xf32>
    %20 = math.rsqrt %19 : vector<8x1xf32>
    %21 = vector.broadcast %20 : vector<8x1xf32> to vector<8x128xf32>
    %22 = arith.mulf %8, %21 : vector<8x128xf32>
    %23 = vector.broadcast %1 : vector<1x128xf32> to vector<8x128xf32>
    %24 = arith.mulf %22, %23 : vector<8x128xf32>
    %25 = vector.broadcast %2 : vector<1x128xf32> to vector<8x128xf32>
    %26 = arith.addf %24, %25 : vector<8x128xf32>
    %c0_10 = arith.constant 0 : index
    %c0_11 = arith.constant 0 : index
    %27 = vector.load %arg4[%c0_10, %c0_11] : memref<128x128xbf16, #tpu.memory_space<vmem>>, vector<128x128xbf16>
    %c0_12 = arith.constant 0 : index
    %c0_13 = arith.constant 0 : index
    %28 = vector.load %arg5[%c0_12, %c0_13] : memref<1x128xf32, #tpu.memory_space<vmem>>, vector<1x128xf32>
    %c0_14 = arith.constant 0 : index
    %c0_15 = arith.constant 0 : index
    %29 = vector.load %arg6[%c0_14, %c0_15] : memref<1x128xf32, #tpu.memory_space<vmem>>, vector<1x128xf32>
    %c0_16 = arith.constant 0 : index
    %c0_17 = arith.constant 0 : index
    %30 = vector.load %arg7[%c0_16, %c0_17] : memref<1x128xf32, #tpu.memory_space<vmem>>, vector<1x128xf32>
    %31 = arith.truncf %26 : vector<8x128xf32> to vector<8x128xbf16>
    %cst_18 = arith.constant dense<0.000000e+00> : vector<8x128xf32>
    %32 = tpu.matmul %31, %27, %cst_18 {dimension_numbers = #tpu.dot_dimension_numbers<[1], [0], [0], [1], [0, 0, 1, 1], [], []>} : vector<8x128xbf16>, vector<128x128xbf16>, vector<8x128xf32> -> vector<8x128xf32>
    %33 = vector.broadcast %28 : vector<1x128xf32> to vector<8x128xf32>
    %34 = arith.addf %32, %33 : vector<8x128xf32>
    %cst_19 = arith.constant 0.000000e+00 : f32
    %35 = vector.broadcast %cst_19 : f32 to vector<8x128xf32>
    %36 = arith.maximumf %34, %35 : vector<8x128xf32>
    %cst_20 = arith.constant dense<0.000000e+00> : vector<8xf32>
    %37 = vector.multi_reduction <add>, %36, %cst_20 [1] : vector<8x128xf32> to vector<8xf32>
    %38 = vector.shape_cast %37 : vector<8xf32> to vector<8x1xf32>
    %cst_21 = arith.constant 0.020833334 : f32
    %39 = vector.broadcast %cst_21 : f32 to vector<8x1xf32>
    %40 = arith.mulf %38, %39 : vector<8x1xf32>
    %41 = arith.mulf %36, %36 : vector<8x128xf32>
    %cst_22 = arith.constant dense<0.000000e+00> : vector<8xf32>
    %42 = vector.multi_reduction <add>, %41, %cst_22 [1] : vector<8x128xf32> to vector<8xf32>
    %43 = vector.shape_cast %42 : vector<8xf32> to vector<8x1xf32>
    %cst_23 = arith.constant 0.020833334 : f32
    %44 = vector.broadcast %cst_23 : f32 to vector<8x1xf32>
    %45 = arith.mulf %43, %44 : vector<8x1xf32>
    %46 = arith.mulf %40, %40 : vector<8x1xf32>
    %47 = arith.subf %45, %46 : vector<8x1xf32>
    %cst_24 = arith.constant 9.99999974E-6 : f32
    %48 = vector.broadcast %cst_24 : f32 to vector<8x1xf32>
    %49 = arith.addf %47, %48 : vector<8x1xf32>
    %50 = math.rsqrt %49 : vector<8x1xf32>
    %51 = vector.broadcast %40 : vector<8x1xf32> to vector<8x128xf32>
    %52 = arith.subf %36, %51 : vector<8x128xf32>
    %53 = vector.broadcast %50 : vector<8x1xf32> to vector<8x128xf32>
    %54 = arith.mulf %52, %53 : vector<8x128xf32>
    %55 = vector.broadcast %29 : vector<1x128xf32> to vector<8x128xf32>
    %56 = arith.mulf %54, %55 : vector<8x128xf32>
    %57 = vector.broadcast %30 : vector<1x128xf32> to vector<8x128xf32>
    %58 = arith.addf %56, %57 : vector<8x128xf32>
    %c0_25 = arith.constant 0 : index
    %c0_26 = arith.constant 0 : index
    %c0_27 = arith.constant 0 : index
    %59 = vector.load %arg8[%c0_25, %c0_26, %c0_27] : memref<2x128x128xbf16, #tpu.memory_space<vmem>>, vector<1x128x128xbf16>
    %60 = vector.shape_cast %59 : vector<1x128x128xbf16> to vector<128x128xbf16>
    %c0_28 = arith.constant 0 : index
    %c0_29 = arith.constant 0 : index
    %c0_30 = arith.constant 0 : index
    %61 = vector.load %arg9[%c0_28, %c0_29, %c0_30] : memref<2x1x128xf32, #tpu.memory_space<vmem>>, vector<1x1x128xf32>
    %62 = vector.shape_cast %61 : vector<1x1x128xf32> to vector<1x128xf32>
    %c0_31 = arith.constant 0 : index
    %c0_32 = arith.constant 0 : index
    %c0_33 = arith.constant 0 : index
    %63 = vector.load %arg10[%c0_31, %c0_32, %c0_33] : memref<2x1x128xf32, #tpu.memory_space<vmem>>, vector<1x1x128xf32>
    %64 = vector.shape_cast %63 : vector<1x1x128xf32> to vector<1x128xf32>
    %c0_34 = arith.constant 0 : index
    %c0_35 = arith.constant 0 : index
    %c0_36 = arith.constant 0 : index
    %65 = vector.load %arg11[%c0_34, %c0_35, %c0_36] : memref<2x1x128xf32, #tpu.memory_space<vmem>>, vector<1x1x128xf32>
    %66 = vector.shape_cast %65 : vector<1x1x128xf32> to vector<1x128xf32>
    %67 = arith.truncf %58 : vector<8x128xf32> to vector<8x128xbf16>
    %cst_37 = arith.constant dense<0.000000e+00> : vector<8x128xf32>
    %68 = tpu.matmul %67, %60, %cst_37 {dimension_numbers = #tpu.dot_dimension_numbers<[1], [0], [0], [1], [0, 0, 1, 1], [], []>} : vector<8x128xbf16>, vector<128x128xbf16>, vector<8x128xf32> -> vector<8x128xf32>
    %69 = vector.broadcast %62 : vector<1x128xf32> to vector<8x128xf32>
    %70 = arith.addf %68, %69 : vector<8x128xf32>
    %cst_38 = arith.constant 0.000000e+00 : f32
    %71 = vector.broadcast %cst_38 : f32 to vector<8x128xf32>
    %72 = arith.maximumf %70, %71 : vector<8x128xf32>
    %cst_39 = arith.constant dense<0.000000e+00> : vector<8xf32>
    %73 = vector.multi_reduction <add>, %72, %cst_39 [1] : vector<8x128xf32> to vector<8xf32>
    %74 = vector.shape_cast %73 : vector<8xf32> to vector<8x1xf32>
    %cst_40 = arith.constant 0.020833334 : f32
    %75 = vector.broadcast %cst_40 : f32 to vector<8x1xf32>
    %76 = arith.mulf %74, %75 : vector<8x1xf32>
    %77 = arith.mulf %72, %72 : vector<8x128xf32>
    %cst_41 = arith.constant dense<0.000000e+00> : vector<8xf32>
    %78 = vector.multi_reduction <add>, %77, %cst_41 [1] : vector<8x128xf32> to vector<8xf32>
    %79 = vector.shape_cast %78 : vector<8xf32> to vector<8x1xf32>
    %cst_42 = arith.constant 0.020833334 : f32
    %80 = vector.broadcast %cst_42 : f32 to vector<8x1xf32>
    %81 = arith.mulf %79, %80 : vector<8x1xf32>
    %82 = arith.mulf %76, %76 : vector<8x1xf32>
    %83 = arith.subf %81, %82 : vector<8x1xf32>
    %cst_43 = arith.constant 9.99999974E-6 : f32
    %84 = vector.broadcast %cst_43 : f32 to vector<8x1xf32>
    %85 = arith.addf %83, %84 : vector<8x1xf32>
    %86 = math.rsqrt %85 : vector<8x1xf32>
    %87 = vector.broadcast %76 : vector<8x1xf32> to vector<8x128xf32>
    %88 = arith.subf %72, %87 : vector<8x128xf32>
    %89 = vector.broadcast %86 : vector<8x1xf32> to vector<8x128xf32>
    %90 = arith.mulf %88, %89 : vector<8x128xf32>
    %91 = vector.broadcast %64 : vector<1x128xf32> to vector<8x128xf32>
    %92 = arith.mulf %90, %91 : vector<8x128xf32>
    %93 = vector.broadcast %66 : vector<1x128xf32> to vector<8x128xf32>
    %94 = arith.addf %92, %93 : vector<8x128xf32>
    %c1 = arith.constant 1 : index
    %c0_44 = arith.constant 0 : index
    %c0_45 = arith.constant 0 : index
    %95 = vector.load %arg8[%c1, %c0_44, %c0_45] : memref<2x128x128xbf16, #tpu.memory_space<vmem>>, vector<1x128x128xbf16>
    %96 = vector.shape_cast %95 : vector<1x128x128xbf16> to vector<128x128xbf16>
    %c1_46 = arith.constant 1 : index
    %c0_47 = arith.constant 0 : index
    %c0_48 = arith.constant 0 : index
    %97 = vector.load %arg9[%c1_46, %c0_47, %c0_48] : memref<2x1x128xf32, #tpu.memory_space<vmem>>, vector<1x1x128xf32>
    %98 = vector.shape_cast %97 : vector<1x1x128xf32> to vector<1x128xf32>
    %c1_49 = arith.constant 1 : index
    %c0_50 = arith.constant 0 : index
    %c0_51 = arith.constant 0 : index
    %99 = vector.load %arg10[%c1_49, %c0_50, %c0_51] : memref<2x1x128xf32, #tpu.memory_space<vmem>>, vector<1x1x128xf32>
    %100 = vector.shape_cast %99 : vector<1x1x128xf32> to vector<1x128xf32>
    %c1_52 = arith.constant 1 : index
    %c0_53 = arith.constant 0 : index
    %c0_54 = arith.constant 0 : index
    %101 = vector.load %arg11[%c1_52, %c0_53, %c0_54] : memref<2x1x128xf32, #tpu.memory_space<vmem>>, vector<1x1x128xf32>
    %102 = vector.shape_cast %101 : vector<1x1x128xf32> to vector<1x128xf32>
    %103 = arith.truncf %94 : vector<8x128xf32> to vector<8x128xbf16>
    %cst_55 = arith.constant dense<0.000000e+00> : vector<8x128xf32>
    %104 = tpu.matmul %103, %96, %cst_55 {dimension_numbers = #tpu.dot_dimension_numbers<[1], [0], [0], [1], [0, 0, 1, 1], [], []>} : vector<8x128xbf16>, vector<128x128xbf16>, vector<8x128xf32> -> vector<8x128xf32>
    %105 = vector.broadcast %98 : vector<1x128xf32> to vector<8x128xf32>
    %106 = arith.addf %104, %105 : vector<8x128xf32>
    %cst_56 = arith.constant 0.000000e+00 : f32
    %107 = vector.broadcast %cst_56 : f32 to vector<8x128xf32>
    %108 = arith.maximumf %106, %107 : vector<8x128xf32>
    %cst_57 = arith.constant dense<0.000000e+00> : vector<8xf32>
    %109 = vector.multi_reduction <add>, %108, %cst_57 [1] : vector<8x128xf32> to vector<8xf32>
    %110 = vector.shape_cast %109 : vector<8xf32> to vector<8x1xf32>
    %cst_58 = arith.constant 0.020833334 : f32
    %111 = vector.broadcast %cst_58 : f32 to vector<8x1xf32>
    %112 = arith.mulf %110, %111 : vector<8x1xf32>
    %113 = arith.mulf %108, %108 : vector<8x128xf32>
    %cst_59 = arith.constant dense<0.000000e+00> : vector<8xf32>
    %114 = vector.multi_reduction <add>, %113, %cst_59 [1] : vector<8x128xf32> to vector<8xf32>
    %115 = vector.shape_cast %114 : vector<8xf32> to vector<8x1xf32>
    %cst_60 = arith.constant 0.020833334 : f32
    %116 = vector.broadcast %cst_60 : f32 to vector<8x1xf32>
    %117 = arith.mulf %115, %116 : vector<8x1xf32>
    %118 = arith.mulf %112, %112 : vector<8x1xf32>
    %119 = arith.subf %117, %118 : vector<8x1xf32>
    %cst_61 = arith.constant 9.99999974E-6 : f32
    %120 = vector.broadcast %cst_61 : f32 to vector<8x1xf32>
    %121 = arith.addf %119, %120 : vector<8x1xf32>
    %122 = math.rsqrt %121 : vector<8x1xf32>
    %123 = vector.broadcast %112 : vector<8x1xf32> to vector<8x128xf32>
    %124 = arith.subf %108, %123 : vector<8x128xf32>
    %125 = vector.broadcast %122 : vector<8x1xf32> to vector<8x128xf32>
    %126 = arith.mulf %124, %125 : vector<8x128xf32>
    %127 = vector.broadcast %100 : vector<1x128xf32> to vector<8x128xf32>
    %128 = arith.mulf %126, %127 : vector<8x128xf32>
    %129 = vector.broadcast %102 : vector<1x128xf32> to vector<8x128xf32>
    %130 = arith.addf %128, %129 : vector<8x128xf32>
    %c0_62 = arith.constant 0 : index
    %c0_63 = arith.constant 0 : index
    %131 = vector.load %arg12[%c0_62, %c0_63] : memref<8x128xf32, #tpu.memory_space<vmem>>, vector<8x128xf32>
    tpu.vector_store %arg12[%c0_62, %c0_63], %130 {strides = array<i32>} : memref<8x128xf32, #tpu.memory_space<vmem>>, vector<8x128xf32>,
    return
  }
  func.func @transform_0(%arg0: i32) -> (i32, i32) {
    %c0_i32 = arith.constant 0 : i32
    %c0_i32_0 = arith.constant 0 : i32
    return %arg0, %c0_i32 : i32, i32
  }
  func.func @transform_1(%arg0: i32) -> (i32, i32) {
    %c0_i32 = arith.constant 0 : i32
    %c0_i32_0 = arith.constant 0 : i32
    %c0_i32_1 = arith.constant 0 : i32
    return %c0_i32, %c0_i32_0 : i32, i32
  }
  func.func @transform_2(%arg0: i32) -> (i32, i32) {
    %c0_i32 = arith.constant 0 : i32
    %c0_i32_0 = arith.constant 0 : i32
    %c0_i32_1 = arith.constant 0 : i32
    return %c0_i32, %c0_i32_0 : i32, i32
  }
  func.func @transform_3(%arg0: i32) -> (i32, i32) {
    %c0_i32 = arith.constant 0 : i32
    %c0_i32_0 = arith.constant 0 : i32
    %c0_i32_1 = arith.constant 0 : i32
    return %c0_i32, %c0_i32_0 : i32, i32
  }
  func.func @transform_4(%arg0: i32) -> (i32, i32) {
    %c0_i32 = arith.constant 0 : i32
    %c0_i32_0 = arith.constant 0 : i32
    %c0_i32_1 = arith.constant 0 : i32
    return %c0_i32, %c0_i32_0 : i32, i32
  }
  func.func @transform_5(%arg0: i32) -> (i32, i32) {
    %c0_i32 = arith.constant 0 : i32
    %c0_i32_0 = arith.constant 0 : i32
    %c0_i32_1 = arith.constant 0 : i32
    return %c0_i32, %c0_i32_0 : i32, i32
  }
  func.func @transform_6(%arg0: i32) -> (i32, i32) {
    %c0_i32 = arith.constant 0 : i32
    %c0_i32_0 = arith.constant 0 : i32
    %c0_i32_1 = arith.constant 0 : i32
    return %c0_i32, %c0_i32_0 : i32, i32
  }
  func.func @transform_7(%arg0: i32) -> (i32, i32, i32) {
    %c0_i32 = arith.constant 0 : i32
    %c0_i32_0 = arith.constant 0 : i32
    %c0_i32_1 = arith.constant 0 : i32
    %c0_i32_2 = arith.constant 0 : i32
    return %c0_i32, %c0_i32_0, %c0_i32_1 : i32, i32, i32
  }
  func.func @transform_8(%arg0: i32) -> (i32, i32, i32) {
    %c0_i32 = arith.constant 0 : i32
    %c0_i32_0 = arith.constant 0 : i32
    %c0_i32_1 = arith.constant 0 : i32
    %c0_i32_2 = arith.constant 0 : i32
    return %c0_i32, %c0_i32_0, %c0_i32_1 : i32, i32, i32
  }
  func.func @transform_9(%arg0: i32) -> (i32, i32, i32) {
    %c0_i32 = arith.constant 0 : i32
    %c0_i32_0 = arith.constant 0 : i32
    %c0_i32_1 = arith.constant 0 : i32
    %c0_i32_2 = arith.constant 0 : i32
    return %c0_i32, %c0_i32_0, %c0_i32_1 : i32, i32, i32
  }
  func.func @transform_10(%arg0: i32) -> (i32, i32, i32) {
    %c0_i32 = arith.constant 0 : i32
    %c0_i32_0 = arith.constant 0 : i32
    %c0_i32_1 = arith.constant 0 : i32
    %c0_i32_2 = arith.constant 0 : i32
    return %c0_i32, %c0_i32_0, %c0_i32_1 : i32, i32, i32
  }
  func.func @transform_11(%arg0: i32) -> (i32, i32) {
    %c0_i32 = arith.constant 0 : i32
    %c0_i32_0 = arith.constant 0 : i32
    return %arg0, %c0_i32 : i32, i32
  }
}

</mosaic_0001>

<bundles_post_ra>
// kernel: tpu_custom_call.1
= control target key start
LH: loop header
LB: loop body
LE: loop exit
PB: predicated region body
PF: predicated region fallthrough
CT: control target
= control target key end

     0   :  { %s1846_s0 = inlined_call_operand.hbm [shape: f32[16,128], index: 0, kind: input, shape index: {}]   ;;  %s1847_s1 = inlined_call_operand.vmem [shape: f32[1,128], index: 1, kind: input, shape index: {}]   ;;  %s1848_s2 = inlined_call_operand.hbm [shape: f32[1,128], index: 2, kind: input, shape index: {}]   ;;  %s1849_s3 = inlined_call_operand.hbm [shape: bf16[128,128], index: 3, kind: input, shape index: {}]   ;;  %s1850_s4 = inlined_call_operand.vmem [shape: f32[1,128], index: 4, kind: input, shape index: {}]   ;;  %s1851_s5 = inlined_call_operand.vmem [shape: f32[1,128], index: 5, kind: input, shape index: {}]   ;;  %s1852_s6 = inlined_call_operand.vmem [shape: f32[1,128], index: 6, kind: input, shape index: {}]   ;;  %s1853_s7 = inlined_call_operand.hbm [shape: bf16[2,128,128], index: 7, kind: input, shape index: {}]   ;;  %s1854_s8 = inlined_call_operand.vmem [shape: f32[2,1,128], index: 8, kind: input, shape index: {}]   ;;  %s1855_s9 = inlined_call_operand.vmem [shape: f32[2,1,128], index: 9, kind: input, shape index: {}]   ;;  %s1856_s10 = inlined_call_operand.vmem [shape: f32[2,1,128], index: 10, kind: input, shape index: {}]   ;;  %s1857_s11 = inlined_call_operand.hbm [shape: f32[16,128], index: 11, kind: output, shape index: {}]  }
   0x1   :  { %1864 = sst [smem:[#allocation17_spill]] %s1848_s2 }
   0x2   :  { %1865 = sst [smem:[#allocation18_spill]] %s1857_s11 }
   0x3   :  { %16 = vsyncpa [#allocation3], 0 }
   0x4   :  { %18 = vsyncpa [#allocation3 + $0x1], 0 }
   0x5   :  { %19 = vsyncpa [#allocation6], 0 }
   0x6   :  { %20 = vsyncpa [#allocation9], 0 }
   0x7   :  { %21 = vsyncpa [#allocation4], 0 }
   0x8   :  { %23 = vsyncpa [#allocation4 + $0x1], 0  ;;  %s1535_s17 = smov 0   ;;  %s1537_s18 = smov 0  }
   0x9   :  { %s1539_s19 = smov 0   ;;  %s1541_s20 = smov 0  }
   0xa LB: > { %1866 = sst [smem:[#allocation15_spill]] %s1452_s17  ;;  %s1556_s21 = sadd.s32 4294967295, %s1464_s20   ;;  %s1464_s20 = sphi %s1541_s20, %s1891_s20   ;;  %s1460_s19 = sphi %s1539_s19, %s1890_s19   ;;  %s1456_s18 = sphi %s1537_s18, %s1889_s18   ;;  %s1452_s17 = sphi %s1535_s17, %s1888_s17  }
   0xb   : > { %s1020_s22 = sadd.s32 4294967294, %s1464_s20   ;;  %p49_p0 = scmp.ne.s32.totalorder %s1456_s18, %s1452_s17 }
   0xc   : > { %p1859_p1 = scmp.eq.s32.totalorder %s1556_s21, 0  ;;  %p289_p3 = scmp.eq.s32.totalorder %s1020_s22, 1 }
   0xd   : > { %p1021_p5 = scmp.ge.s32.totalorder %s1464_s20, 1  ;;  %p296_p7 = scmp.lt.s32.totalorder %s1464_s20, 3 }
   0xe   : > { %p1565_p4 = por %p1859_p1, %p49_p0  ;;  %p1570_p6 = por %p289_p3, %p49_p0 }
   0xf   : > { %p1575_p8 = pnand %p1021_p5, %p296_p7  ;;  %s1466_s26 = smov [#allocation5]  }
  0x10   : > { %s1867_s23 = scalar_select %p1565_p4, 1, 0 }
  0x11   : > { %s1868_s24 = scalar_select %p1570_p6, 1, 0 }
  0x12   : > { %s1870_s25 = scalar_select %p1575_p8, 1, 0 }
  0x13   : > { %1869 = sst [smem:[#allocation16_spill]] %s1868_s24  ;;  %s312_s27 = sshll.u32 %s1466_s26, 4  ;;  %s313_s27 = int_to_ptr.vmem [resolvable:$true] %s312_s27 }
  0x14   : > { %p1179_p10 = pneg %p1575_p8  ;;  %s1467_s28 = smov [#allocation7]  }
  0x15   : > { %s322_s29 = sshll.u32 %s1467_s28, 4  ;;  %s1468_s12 = smov [#allocation8]   ;;  %s1588_s29 = int_to_ptr.vmem [resolvable:$true] %s322_s29 }
  0x16   : > { %p1584_p11 = pnand %p1179_p10, %p1859_p1  ;;  %s1590_s13 = sshll.u32 %s1468_s12, 4  ;;  %s345_s13 = int_to_ptr.vmem [resolvable:$true] %s1590_s13 }
  0x17   : > { %s1872_s2 = sld [smem:[#allocation17_spill]] }
  0x18   : > { %p1600_p13 = pneg %p1584_p11 }
  0x1d   : > { %s1276_s16 = scalar_lea.hbm %s1872_s2, 16 }
  0x1e   : > { %p1277_p12 = scmp.ne.s32.totalorder %s1872_s2, %s1276_s16  ;;  %p1283_p5 = scmp.lt.u32.totalorder %s1276_s16, %s1872_s2 }
  0x20   : > { %p1279_p0 = pnand %p1600_p13, %p1277_p12 }
  0x22   : > { %p1280_p3 = pneg %p1279_p0 }
  0x24   : > { %p1285_p7 = pnand %p1283_p5, %p1280_p3 }
  0x26   : > { %1288 = shalt.err (!%p1285_p7)
}
  0x27   : > { %s1289_s14 = scalar_lea.vmem %s313_s27, 16  ;;  %s1296_s15 = scalar_lea.vmem %s313_s27, 32 }
  0x28   : > { %p1290_p10 = scmp.ne.s32.totalorder %s313_s27, %s1289_s14  ;;  %p1297_p2 = scmp.lt.s32.totalorder %s313_s27, %s313_s27 }
  0x29   : > { %p1298_p6 = scmp.lt.s32.totalorder %s1296_s15, %s1289_s14 }
  0x2a   : > { %p1292_p9 = pnand %p1290_p10, %p1600_p13 }
  0x2b   : > { %p1299_p4 = por %p1298_p6, %p1297_p2 }
  0x2c   : > { %p1293_p1 = pneg %p1292_p9 }
  0x2e   : > { %p1300_p8 = pnand %p1299_p4, %p1293_p1 }
  0x30   : > { %1303 = shalt.err (!%p1300_p8)
}
  0x31   : > { %1182 = dma.hbm_to_vmem [thread:$0]  (!%p1584_p11), %s1872_s2, 16, %s313_s27, [#allocation6]  }
  0x32   : > { %s1304_s12 = scalar_lea.hbm %s1849_s3, 1024 }
  0x33   : > { %p1305_p9 = scmp.ne.s32.totalorder %s1849_s3, %s1304_s12  ;;  %p1311_p1 = scmp.lt.u32.totalorder %s1304_s12, %s1849_s3 }
  0x35   : > { %p1307_p12 = pnand %p1305_p9, %p1600_p13 }
  0x37   : > { %p1308_p2 = pneg %p1307_p12 }
  0x39   : > { %p1313_p4 = pnand %p1311_p1, %p1308_p2 }
  0x3b   : > { %1316 = shalt.err (!%p1313_p4)
}
  0x3c   : > { %s1317_s27 = scalar_lea.vmem %s1588_s29, 1024  ;;  %p1325_p3 = scmp.lt.s32.totalorder %s1588_s29, %s1588_s29 }
  0x3d   : > { %p1318_p6 = scmp.ne.s32.totalorder %s1588_s29, %s1317_s27  ;;  %p1326_p5 = scmp.lt.s32.totalorder %s1317_s27, %s1317_s27 }
  0x3f   : > { %p1320_p8 = pnand %p1318_p6, %p1600_p13  ;;  %p1327_p7 = por %p1326_p5, %p1325_p3 }
  0x41   : > { %p1321_p0 = pneg %p1320_p8 }
  0x43   : > { %p1328_p10 = pnand %p1327_p7, %p1321_p0 }
  0x45   : > { %1331 = shalt.err (!%p1328_p10)
}
  0x46   : > { %s1469_s11 = smov 64   ;;  %s1470_s17 = smov 4  }
  0x47   : > { %1185 = dma.hbm_to_vmem [thread:$0]  (!%p1584_p11), %s1849_s3, 1024, %s1588_s29, [#allocation6], %s1469_s11, %s1469_s11, %s1470_s17  }
  0x48   : > { %s1332_s12 = scalar_lea.hbm %s1853_s7, 2048 }
  0x49   : > { %p1333_p9 = scmp.ne.s32.totalorder %s1853_s7, %s1332_s12  ;;  %p1339_p1 = scmp.lt.u32.totalorder %s1332_s12, %s1853_s7 }
  0x4b   : > { %p1335_p12 = pnand %p1333_p9, %p1600_p13 }
  0x4d   : > { %p1336_p2 = pneg %p1335_p12 }
  0x4f   : > { %p1341_p4 = pnand %p1339_p1, %p1336_p2 }
  0x51   : > { %1344 = shalt.err (!%p1341_p4)
}
  0x52   : > { %s1345_s22 = scalar_lea.vmem %s345_s13, 2048  ;;  %p1353_p3 = scmp.lt.s32.totalorder %s345_s13, %s345_s13 }
  0x53   : > { %p1346_p6 = scmp.ne.s32.totalorder %s345_s13, %s1345_s22  ;;  %p1354_p5 = scmp.lt.s32.totalorder %s1345_s22, %s1345_s22 }
  0x55   : > { %p1348_p8 = pnand %p1346_p6, %p1600_p13  ;;  %p1355_p7 = por %p1354_p5, %p1353_p3 }
  0x57   : > { %p1349_p0 = pneg %p1348_p8 }
  0x59   : > { %p1356_p10 = pnand %p1355_p7, %p1349_p0 }
  0x5b   : > { %1359 = shalt.err (!%p1356_p10)
}
  0x5c   : > { %1188 = dma.hbm_to_vmem [thread:$0]  (!%p1584_p11), %s1853_s7, 2048, %s345_s13, [#allocation9], %s1469_s11, %s1469_s11, %s1470_s17  }
  0x5d   : > { %s1659_s2 = sadd.s32 1, %s1464_s20   ;;  %s36_s30 = sadd.s32 1, %s1460_s19 }
  0x5e   : > { %s33_s28 = ssub.s32 %s1464_s20, %s1659_s2  ;;  %p43_p9 = scmp.ne.s32.totalorder %s1460_s19, %s1456_s18 }
  0x5f   : > { %p34_p13 = scmp.eq.s32.totalorder %s33_s28, 0  ;;  %p44_p12 = scmp.eq.s32.totalorder %s1464_s20, 0 }
  0x60   : > { %p1200_p2 = scmp.lt.s32.totalorder %s1464_s20, 2  ;;  %p1874_p4 = scmp.eq.s32.totalorder %s1556_s21, 1 }
  0x61   : > { %s1669_s24 = scalar_select %p34_p13, %s1460_s19, %s36_s30  }
  0x62   : > { %p45_p1 = por %p44_p12, %p43_p9  ;;  %p1673_p6 = por %p1874_p4, %p43_p9 }
  0x63   : > { %s367_s12 = sand.u32 1, %s1460_s19   ;;  %s1027_s14 = sshll.u32 %s1464_s20, 7 }
  0x64   : > { %s1026_s13 = sshll.u32 %s367_s12, 3  ;;  %s1682_s15 = scalar_lea.hbm %s1846_s0, %s1027_s14 }
  0x65   : > { %s371_s27 = scalar_lea.vmem [#allocation2], %s1026_s13  ;;  %p1684_p11 = pnand %p1200_p2, %p45_p1 }
  0x66   : > { %s378_s22 = sshll.u32 %s371_s27, 4  ;;  %s368_s26 = scalar_lea.sflag [#allocation3], %s367_s12  ;;  %s1688_s22 = int_to_ptr.vmem [resolvable:$true] %s378_s22 }
  0x67   : > { %s1360_s28 = scalar_lea.hbm %s1682_s15, 128  ;;  %p1362_p0 = pneg %p1684_p11 }
  0x68   : > { %p1361_p8 = scmp.ne.s32.totalorder %s1682_s15, %s1360_s28  ;;  %s1365_s13 = scalar_lea.hbm %s1846_s0, 256 }
  0x69   : > { %p1366_p7 = scmp.lt.u32.totalorder %s1682_s15, %s1846_s0  ;;  %p1367_p10 = scmp.lt.u32.totalorder %s1365_s13, %s1360_s28 }
  0x6a   : > { %p1363_p3 = pnand %p1362_p0, %p1361_p8  ;;  %p1369_p9 = scmp.lt.u32.totalorder %s1360_s28, %s1682_s15 }
  0x6b   : > { %p1368_p13 = por %p1367_p10, %p1366_p7 }
  0x6c   : > { %p1364_p5 = pneg %p1363_p3 }
  0x6d   : > { %p1370_p12 = por %p1369_p9, %p1368_p13 }
  0x6f   : > { %p1371_p2 = pnand %p1370_p12, %p1364_p5 }
  0x71   : > { %1374 = shalt.err (!%p1371_p2)
}
  0x72   : > { %s1375_s12 = scalar_lea.vmem %s1688_s22, 128  ;;  %s1471_s27 = smov [#allocation2]  }
  0x73   : > { %p1376_p1 = scmp.ne.s32.totalorder %s1688_s22, %s1375_s12  ;;  %s1380_s30 = sshll.u32 %s1471_s27, 4  ;;  %s1381_s30 = int_to_ptr.vmem [resolvable:$false] %s1380_s30 }
  0x74   : > { %s1382_s14 = scalar_lea.vmem %s1381_s30, 256  ;;  %p1383_p3 = scmp.lt.s32.totalorder %s1688_s22, %s1381_s30 }
  0x75   : > { %p1378_p4 = pnand %p1376_p1, %p1362_p0  ;;  %p1384_p7 = scmp.lt.s32.totalorder %s1382_s14, %s1375_s12 }
  0x77   : > { %p1379_p8 = pneg %p1378_p4  ;;  %p1385_p10 = por %p1384_p7, %p1383_p3 }
  0x79   : > { %p1386_p13 = pnand %p1385_p10, %p1379_p8 }
  0x7b   : > { %1389 = shalt.err (!%p1386_p13)
}
  0x7c   : > { %1192 = dma.hbm_to_vmem [thread:$0]  (!%p1684_p11), %s1682_s15, 128, %s1688_s22, %s368_s26  }
  0x7d   : > { %p1877_p5 = scmp.ne.s32.totalorder %s1870_s25, 0 }
  0x7e   : > { %s1718_s28 = sand.u32 (!%p1877_p5), 1, %s1456_s18   ;;  %p1878_p0 = scmp.ne.s32.totalorder (!%p1877_p5), %s1867_s23, 0 }
  0x7f   : > { %387 = sbr.rel (%p1877_p5) target bundleno = 1627 (0x65b), region = 64  ;;  %s1029_s13 = sshll.u32 (!%p1877_p5), %s1718_s28, 3 }
  0x80   : > { %s390_s11 = scalar_lea.sflag (!%p1877_p5), [#allocation3], %s1718_s28  ;;  %s393_s17 = scalar_lea.vmem (!%p1877_p5), [#allocation2], %s1029_s13 }
  0x86   : > { %1435 = dma.done.wait (%p1878_p0), %s390_s11, 128  }
  0x87   : > { %1437 = vsyncadd (%p1878_p0), %s390_s11, 4294967168  ;;  %p1879_p11 = scmp.eq.s32.totalorder %s1556_s21, 0 }
  0x89   : > { %1439 = dma.done.wait (%p1879_p11), [#allocation6], 1040   ;;  %p1880_p9 = pmov %p1879_p11 }
  0x8b   : > { %1441 = vsyncadd (%p1880_p9), [#allocation6], 4294966256  ;;  %p1881_p12 = pmov %p1880_p9 }
  0x8c   : > { %p1882_p2 = pmov %p1880_p9 }
  0x8d   : > { %1443 = dma.done.wait (%p1881_p12), [#allocation9], 2048  }
  0x8e   : > { %1445 = vsyncadd (%p1882_p2), [#allocation9], 4294965248  ;;  %v445_v0 = vld [vmem:[%s393_s17] sm:$0xff]  ;;  %v1244_v1 = vld [vmem:[#allocation7] sm:$0xff]   ;;  %v1472_v2 = vmov 0.0   ;;  %vm1473_vm0 = vmmov 0  }
  0x8f   : > { %448 = vadd.xlane.f32.xlu0 %v445_v0  ;;  %1103 = vmatprep.subr.bf16.mxu0 %v1472_v2  ;;  %v1245_v3 = vld [vmem:[#allocation7 + $0x8] sm:$0xff]   ;;  %v1246_v8 = vld [vmem:[#allocation7 + $0x10] sm:$0xff]   ;;  %v1247_v9 = vld [vmem:[#allocation7 + $0x18] sm:$0xff]   ;;  %s1073_s30 = sshll.u32 %s1556_s21, 7  ;;  %s443_s14 = scalar_lea.vmem [#allocation10], %s1029_s13 }
  0x90   : > { %1123 = vmatprep.subr.bf16.mxu1 %v1472_v2  ;;  %1104 = vmatpush3.bf16.msra.mxu0 %v1244_v1  ;;  %v1248_v10 = vld [vmem:[#allocation7 + $0x20] sm:$0xff]   ;;  %v1249_v11 = vld [vmem:[#allocation7 + $0x28] sm:$0xff]   ;;  %v1250_v12 = vld [vmem:[#allocation7 + $0x30] sm:$0xff]   ;;  %s921_s11 = sshll.u32 %s443_s14, 4  ;;  %s1883_s25 = sld [smem:[#allocation18_spill]]  ;;  %s1804_s11 = int_to_ptr.vmem [resolvable:$true] %s921_s11 }
  0x91   : > { %1105 = vmatprep.subr.bf16.mxu0 %v1472_v2  ;;  %1119 = vmatprep.mubr.msk.bf16.mxu0 %vm1473_vm0, %v1472_v2  ;;  %v1251_v13 = vld [vmem:[#allocation7 + $0x38] sm:$0xff]   ;;  %v1034_v21 = vld [vmem:[%s1847_s1] ss:$0 sm:$0xff]  ;;  %v1252_v27 = vld [vmem:[#allocation8] sm:$0xff]   ;;  %s908_s22 = scalar_lea.sflag [#allocation4], %s1718_s28  ;;  %s1390_s29 = scalar_lea.vmem %s1804_s11, 128 }
  0x92   : > { %1139 = vmatprep.mubr.msk.bf16.mxu1 %vm1473_vm0, %v1472_v2  ;;  %v1035_v23 = vld [vmem:[#allocation5] ss:$0 sm:$0xff]  ;;  %1124 = vmatpush3.bf16.msra.mxu1 %v1252_v27  ;;  %v1036_v28 = vld [vmem:[%s1850_s4] ss:$0 sm:$0xff]  ;;  %v1254_v37 = vld [vmem:[#allocation8 + $0x10] sm:$0xff]   ;;  %p1391_p1 = scmp.ne.s32.totalorder %s1804_s11, %s1390_s29  ;;  %s1474_s21 = smov [#allocation10]  }
  0x93   : > { %1125 = vmatprep.subr.bf16.mxu1 %v1472_v2  ;;  %v1253_v36 = vld [vmem:[#allocation8 + $0x8] sm:$0xff]   ;;  %v1255_v38 = vld [vmem:[#allocation8 + $0x18] sm:$0xff]   ;;  %v1256_v39 = vld [vmem:[#allocation8 + $0x20] sm:$0xff]   ;;  %s1394_s13 = sshll.u32 %s1474_s21, 4  ;;  %s1395_s13 = int_to_ptr.vmem [resolvable:$false] %s1394_s13 }
  0x94   : > { %1106 = vmatpush3.bf16.msra.mxu0 %v1245_v3  ;;  %v1257_v40 = vld [vmem:[#allocation8 + $0x28] sm:$0xff]   ;;  %v1258_v41 = vld [vmem:[#allocation8 + $0x30] sm:$0xff]   ;;  %v1259_v42 = vld [vmem:[#allocation8 + $0x38] sm:$0xff]   ;;  %p1392_p4 = pnand %p1391_p1, %p1673_p6  ;;  %s1396_s26 = scalar_lea.vmem %s1395_s13, 256 }
  0x95   : > { %1107 = vmatprep.subr.bf16.mxu0 %v1472_v2  ;;  %v1045_v52 = vld [vmem:[%s1851_s5] ss:$0 sm:$0xff]  ;;  %v1260_v58 = vld [vmem:[#allocation8 + $0x40] sm:$0xff]   ;;  %p1397_p3 = scmp.lt.s32.totalorder %s1804_s11, %s1395_s13  ;;  %p1398_p7 = scmp.lt.s32.totalorder %s1396_s26, %s1390_s29 }
  0x96   : > { %1126 = vmatpush3.bf16.msra.mxu1 %v1253_v36  ;;  %v1046_v54 = vld [vmem:[%s1852_s6] ss:$0 sm:$0xff]  ;;  %s1802_s15 = scalar_lea.hbm %s1883_s25, %s1073_s30  ;;  %p1393_p8 = pneg %p1392_p4 }
  0x97   : > { %1127 = vmatprep.subr.bf16.mxu1 %v1472_v2  ;;  %v1047_v59 = vld [vmem:[%s1854_s8] ss:$0 sm:$0xff]  ;;  %p1399_p10 = por %p1398_p7, %p1397_p3 }
  0x98   : > { %1108 = vmatpush3.bf16.msra.mxu0 %v1246_v8  ;;  %v1265_v8 = vld [vmem:[#allocation8 + $0x68] sm:$0xff]  }
  0x99   : > { %1109 = vmatprep.subr.bf16.mxu0 %v1472_v2  ;;  %p1400_p13 = pnand %p1399_p10, %p1393_p8 }
  0x9a   : > { %1128 = vmatpush3.bf16.msra.mxu1 %v1254_v37 }
  0x9b   : > { %1129 = vmatprep.subr.bf16.mxu1 %v1472_v2 }
  0x9c   : > { %1110 = vmatpush3.bf16.msra.mxu0 %v1247_v9  ;;  %v1266_v9 = vld [vmem:[#allocation8 + $0x70] sm:$0xff]  }
  0x9d   : > { %1111 = vmatprep.subr.bf16.mxu0 %v1472_v2 }
  0x9e   : > { %1130 = vmatpush3.bf16.msra.mxu1 %v1255_v38 }
  0x9f   : > { %1131 = vmatprep.subr.bf16.mxu1 %v1472_v2 }
  0xa0   : > { %1112 = vmatpush3.bf16.msra.mxu0 %v1248_v10  ;;  %v1267_v10 = vld [vmem:[#allocation8 + $0x78] sm:$0xff]  }
  0xa1   : > { %1113 = vmatprep.subr.bf16.mxu0 %v1472_v2 }
  0xa2   : > { %1132 = vmatpush3.bf16.msra.mxu1 %v1256_v39 }
  0xa3   : > { %1133 = vmatprep.subr.bf16.mxu1 %v1472_v2 }
  0xa4   : > { %1114 = vmatpush3.bf16.msra.mxu0 %v1249_v11 }
  0xa5   : > { %1115 = vmatprep.subr.bf16.mxu0 %v1472_v2 }
  0xa6   : > { %1134 = vmatpush3.bf16.msra.mxu1 %v1257_v40 }
  0xa7   : > { %1135 = vmatprep.subr.bf16.mxu1 %v1472_v2 }
  0xa8   : > { %1116 = vmatpush3.bf16.msra.mxu0 %v1250_v12 }
  0xa9   : > { %1117 = vmatprep.subr.bf16.mxu0 %v1472_v2 }
  0xaa   : > { %1136 = vmatpush3.bf16.msra.mxu1 %v1258_v41 }
  0xab   : > { %1137 = vmatprep.subr.bf16.mxu1 %v1472_v2 }
  0xac   : > { %1118 = vmatpush3.bf16.msra.mxu0 %v1251_v13 }
  0xad   : > { %1143 = vmatprep.subr.bf16.mxu0 %v1472_v2 }
  0xae   : > { %1138 = vmatpush3.bf16.msra.mxu1 %v1259_v42  ;;  %v1070_v42 = vld [vmem:[%s1855_s9 + $0x1] ss:$0 sm:$0xff] }
 0x11c   : > { %v449_v4 = vpop.xlane.xlu0 %448 }
 0x11d   : > { %v450_v5 = vmul.f32 0.05, %v449_v4  ;;  %v1261_v4 = vld [vmem:[#allocation8 + $0x48] sm:$0xff]  }
 0x11f   : > { %v451_v6 = vsub.f32 %v445_v0, %v450_v5  ;;  %v455_v14 = vmul.f32 108.0, %v450_v5 }
 0x121   : > { %v452_v7 = vmul.f32 %v451_v6, %v451_v6  ;;  %v456_v15 = vmul.f32 %v455_v14, %v450_v5  ;;  %v1262_v5 = vld [vmem:[#allocation8 + $0x50] sm:$0xff]  }
 0x123   : > { %453 = vadd.xlane.f32.xlu0 %v452_v7  ;;  %v1264_v7 = vld [vmem:[#allocation8 + $0x60] sm:$0xff]  }
 0x1b0   : > { %v454_v16 = vpop.xlane.xlu0 %453 }
 0x1b1   : > { %v457_v17 = vsub.f32 %v454_v16, %v456_v15 }
 0x1b3   : > { %v458_v18 = vmul.f32 0.05, %v457_v17 }
 0x1b5   : > { %v459_v19 = vadd.f32 1e-05, %v458_v18 }
 0x1b7   : > { %1268 = vrsqrt.f32 %v459_v19 }
 0x1c1   : > { %v1269_v20 = vpop.eup %1268 }
 0x1c2   : > { %v461_v22 = vmul.f32 %v1269_v20, %v451_v6  ;;  %v1263_v6 = vld [vmem:[#allocation8 + $0x58] sm:$0xff]   ;;  %v1056_v20 = vld [vmem:[%s1855_s9] ss:$0 sm:$0xff] }
 0x1c4   : > { %v468_v24 = vmul.f32 %v1034_v21, %v461_v22 }
 0x1c6   : > { %v475_v25 = vadd.f32 %v1035_v23, %v468_v24 }
 0x1c8   : > { %v495_v26 = vpack.c.bf16 %v475_v25, %v475_v25  ;;  %v1061_v25 = vld [vmem:[%s1854_s8 + $0x1] ss:$0 sm:$0xff] }
 0x1ca   : > { %1120 = vmatmul.mubr.bf16.vlgmr.msra.gmra.mrb[0].mxu0 %v495_v26 }
 0x1cb   : > { %1159 = vmatprep.mubr.msk.bf16.mxu0 %vm1473_vm0, %v1472_v2  ;;  %1144 = vmatpush3.bf16.msra.mxu0 %v1260_v58 }
 0x1cc   : > { %1145 = vmatprep.subr.bf16.mxu0 %v1472_v2 }
 0x1cf   : > { %1146 = vmatpush3.bf16.msra.mxu0 %v1261_v4 }
 0x1d0   : > { %1147 = vmatprep.subr.bf16.mxu0 %v1472_v2 }
 0x1d3   : > { %1148 = vmatpush3.bf16.msra.mxu0 %v1262_v5 }
 0x1d4   : > { %1149 = vmatprep.subr.bf16.mxu0 %v1472_v2 }
 0x1d7   : > { %1150 = vmatpush3.bf16.msra.mxu0 %v1263_v6 }
 0x1d8   : > { %1151 = vmatprep.subr.bf16.mxu0 %v1472_v2 }
 0x1db   : > { %1152 = vmatpush3.bf16.msra.mxu0 %v1264_v7 }
 0x1dc   : > { %1153 = vmatprep.subr.bf16.mxu0 %v1472_v2 }
 0x1df   : > { %1154 = vmatpush3.bf16.msra.mxu0 %v1265_v8 }
 0x1e0   : > { %1155 = vmatprep.subr.bf16.mxu0 %v1472_v2 }
 0x1e3   : > { %1156 = vmatpush3.bf16.msra.mxu0 %v1266_v9 }
 0x1e4   : > { %1157 = vmatprep.subr.bf16.mxu0 %v1472_v2  ;;  %v1057_v2 = vld [vmem:[%s1856_s10] ss:$0 sm:$0xff] }
 0x1e7   : > { %1158 = vmatpush3.bf16.msra.mxu0 %v1267_v10 }
 0x29d   : > { %v584_v29 = vpop.f32.mrb[0].mxu0 }
 0x29e   : > { %v585_v30 = vadd.f32 %v1036_v28, %v584_v29  ;;  %v1121_v31 = vpop.f32.mrb[1].mxu0 }
 0x29f   : > { %v587_v32 = vpop.f32.mrb[2].mxu0 }
 0x2a0   : > { %v590_v33 = vmax.f32 %v585_v30, 0.0  ;;  %v1122_v34 = vpop.f32.mrb[3].mxu0 }
 0x2a2   : > { %591 = vadd.xlane.f32.xlu1 %v590_v33  ;;  %v594_v35 = vmul.f32 %v590_v33, %v590_v33 }
 0x2a6   : > { %595 = vadd.xlane.f32.xlu1 %v594_v35 }
 0x32f   : > { %v592_v43 = vpop.xlane.xlu1 %591 }
 0x330   : > { %v593_v44 = vmul.f32 0.020833334, %v592_v43 }
 0x332   : > { %v598_v46 = vmul.f32 %v593_v44, %v593_v44  ;;  %v602_v50 = vsub.f32 %v590_v33, %v593_v44  ;;  %v1071_v44 = vld [vmem:[%s1856_s10 + $0x1] ss:$0 sm:$0xff] }
 0x333   : > { %v596_v45 = vpop.xlane.xlu1 %595 }
 0x334   : > { %v597_v47 = vmul.f32 0.020833334, %v596_v45 }
 0x336   : > { %v599_v48 = vsub.f32 %v597_v47, %v598_v46 }
 0x338   : > { %v600_v49 = vadd.f32 1e-05, %v599_v48 }
 0x33a   : > { %1270 = vrsqrt.f32 %v600_v49 }
 0x344   : > { %v1271_v51 = vpop.eup %1270 }
 0x345   : > { %v603_v53 = vmul.f32 %v1271_v51, %v602_v50 }
 0x347   : > { %v610_v55 = vmul.f32 %v1045_v52, %v603_v53 }
 0x349   : > { %v617_v56 = vadd.f32 %v1046_v54, %v610_v55 }
 0x34b   : > { %v637_v57 = vpack.c.bf16 %v617_v56, %v617_v56 }
 0x34d   : > { %1140 = vmatmul.mubr.bf16.vlgmr.msra.gmra.mrb[0].mxu1 %v637_v57 }
 0x420   : > { %v726_v60 = vpop.f32.mrb[0].mxu1 }
 0x421   : > { %v727_v61 = vadd.f32 %v1047_v59, %v726_v60  ;;  %v1141_v62 = vpop.f32.mrb[1].mxu1 }
 0x422   : > { %v729_v63 = vpop.f32.mrb[2].mxu1 }
 0x423   : > { %v732_v0 = vmax.f32 %v727_v61, 0.0  ;;  %v1142_v1 = vpop.f32.mrb[3].mxu1 }
 0x425   : > { %733 = vadd.xlane.f32.xlu0 %v732_v0  ;;  %v736_v3 = vmul.f32 %v732_v0, %v732_v0 }
 0x427   : > { %737 = vadd.xlane.f32.xlu1 %v736_v3 }
 0x4b2   : > { %v734_v11 = vpop.xlane.xlu0 %733 }
 0x4b3   : > { %v735_v12 = vmul.f32 0.020833334, %v734_v11 }
 0x4b4   : > { %v738_v13 = vpop.xlane.xlu1 %737 }
 0x4b5   : > { %v740_v14 = vmul.f32 %v735_v12, %v735_v12  ;;  %v739_v15 = vmul.f32 0.020833334, %v738_v13  ;;  %v744_v18 = vsub.f32 %v732_v0, %v735_v12 }
 0x4b7   : > { %v741_v16 = vsub.f32 %v739_v15, %v740_v14 }
 0x4b9   : > { %v742_v17 = vadd.f32 1e-05, %v741_v16 }
 0x4bb   : > { %1272 = vrsqrt.f32 %v742_v17 }
 0x4c5   : > { %v1273_v19 = vpop.eup %1272 }
 0x4c6   : > { %v745_v21 = vmul.f32 %v1273_v19, %v744_v18 }
 0x4c8   : > { %v752_v22 = vmul.f32 %v1056_v20, %v745_v21 }
 0x4ca   : > { %v759_v23 = vadd.f32 %v1057_v2, %v752_v22 }
 0x4cc   : > { %v783_v24 = vpack.c.bf16 %v759_v23, %v759_v23 }
 0x4ce   : > { %1160 = vmatmul.mubr.bf16.vlgmr.msra.gmra.mrb[4].mxu0 %v783_v24 }
 0x5a1   : > { %v872_v26 = vpop.f32.mrb[4].mxu0 }
 0x5a2   : > { %v873_v27 = vadd.f32 %v1061_v25, %v872_v26  ;;  %v1161_v28 = vpop.f32.mrb[5].mxu0 }
 0x5a3   : > { %v875_v29 = vpop.f32.mrb[6].mxu0 }
 0x5a4   : > { %v878_v30 = vmax.f32 %v873_v27, 0.0  ;;  %v1162_v31 = vpop.f32.mrb[7].mxu0 }
 0x5a6   : > { %879 = vadd.xlane.f32.xlu0 %v878_v30  ;;  %v882_v32 = vmul.f32 %v878_v30, %v878_v30 }
 0x5a8   : > { %883 = vadd.xlane.f32.xlu1 %v882_v32 }
 0x633   : > { %v880_v33 = vpop.xlane.xlu0 %879 }
 0x634   : > { %v881_v34 = vmul.f32 0.020833334, %v880_v33 }
 0x635   : > { %v884_v35 = vpop.xlane.xlu1 %883 }
 0x636   : > { %v886_v36 = vmul.f32 %v881_v34, %v881_v34  ;;  %v885_v37 = vmul.f32 0.020833334, %v884_v35  ;;  %v890_v40 = vsub.f32 %v878_v30, %v881_v34 }
 0x638   : > { %v887_v38 = vsub.f32 %v885_v37, %v886_v36 }
 0x63a   : > { %v888_v39 = vadd.f32 1e-05, %v887_v38 }
 0x63c   : > { %1274 = vrsqrt.f32 %v888_v39 }
 0x646   : > { %v1275_v41 = vpop.eup %1274 }
 0x647   : > { %v891_v43 = vmul.f32 %v1275_v41, %v890_v40 }
 0x649   : > { %v898_v45 = vmul.f32 %v1070_v42, %v891_v43 }
 0x64b   : > { %v905_v46 = vadd.f32 %v1071_v44, %v898_v45 }
 0x64d   : > { %906 = vst [vmem:[%s443_s14] sm:$0xff] %v905_v46 }
 0x64e   : > { %1403 = shalt.err (!%p1400_p13)
}
 0x64f   : > { %s1404_s28 = scalar_lea.hbm %s1802_s15, 128  ;;  %s1408_s30 = scalar_lea.hbm %s1883_s25, 256 }
 0x650   : > { %p1405_p5 = scmp.ne.s32.totalorder %s1802_s15, %s1404_s28  ;;  %p1409_p9 = scmp.lt.u32.totalorder %s1802_s15, %s1883_s25 }
 0x651   : > { %p1410_p12 = scmp.lt.u32.totalorder %s1408_s30, %s1404_s28  ;;  %p1412_p1 = scmp.lt.u32.totalorder %s1404_s28, %s1802_s15 }
 0x652   : > { %p1406_p0 = pnand %p1405_p5, %p1673_p6 }
 0x653   : > { %p1411_p2 = por %p1410_p12, %p1409_p9 }
 0x654   : > { %p1407_p11 = pneg %p1406_p0 }
 0x655   : > { %p1413_p4 = por %p1412_p1, %p1411_p2 }
 0x657   : > { %p1414_p8 = pnand %p1413_p4, %p1407_p11 }
 0x659   : > { %1417 = shalt.err (!%p1414_p8)
}
 0x65a   : > { %1177 = dma.vmem_to_hbm [thread:$0]  (%p1673_p6), %s1804_s11, 128, %s1802_s15, %s908_s22  }
 0x65b PF: > { %s1884_s23 = sld [smem:[#allocation15_spill]]  ;;  %s1885_s29 = sld [smem:[#allocation16_spill]] }
 0x65c   : > { %p1887_p7 = scmp.ge.s32.totalorder %s1464_s20, 2 }
 0x661   : > { %s933_s21 = sand.u32 1, %s1884_s23   ;;  %p1886_p3 = scmp.ne.s32.totalorder %s1885_s29, 0 }
 0x662   : > { %s934_s13 = scalar_lea.sflag [#allocation4], %s933_s21 }
 0x663   : > { %p1194_p10 = pnand %p1887_p7, %p1886_p3 }
 0x665   : > { %1447 = dma.done.wait (!%p1194_p10), %s934_s13, 128  }
 0x666   : > { %1449 = vsyncadd (!%p1194_p10), %s934_s13, 4294967168  ;;  %p26_p13 = scmp.ge.s32.totalorder %s1659_s2, 4   ;;  %s1888_s17 = smov %s1456_s18 }
 0x667   : > { %s1889_s18 = smov %s1460_s19  ;;  %s1890_s19 = smov %s1669_s24 }
 0x668   : > { %s1891_s20 = smov %s1659_s2  ;;  %28 = sbr.rel (!%p26_p13) target bundleno = 10 (0xa), region = 125 }
 0x66f   :  { %939 = vsyncpa [#allocation3], 1 }
 0x670   :  { %941 = vsyncpa [#allocation3 + $0x1], 1 }
 0x671   :  { %942 = vsyncpa [#allocation6], 1 }
 0x672   :  { %943 = vsyncpa [#allocation9], 1 }
 0x673   :  { %944 = vsyncpa [#allocation4], 1 }
 0x674   :  { %946 = vsyncpa [#allocation4 + $0x1], 1 }

</bundles_post_ra>
